<compile_context>
chip_gen: v5e
topology: v5e:2x2
jax: 0.10.0
libtpu: 0.0.40
codegen_flags: <defaults>
</compile_context>

<pallas_src>
import math

import jax
import jax.numpy as jnp
from jax.experimental import pallas as pl
from jax.experimental.pallas import tpu as pltpu


def _drop_path_kernel(x_ref, scale_ref, o_ref):
    # scale_ref: (tb, 1) float32, per-sample value in {0, 1/keep_prob}.
    # Multiply in the activation dtype (bf16-native on v6e/v7x, f32 path on v5e).
    scale = scale_ref[...].astype(x_ref.dtype)
    o_ref[...] = (x_ref[...] * scale).astype(o_ref.dtype)


def _pick_tiles(B, M, itemsize, target_bytes):
    """Lane-dense tm (multiple of 128, grown first), then tb (sublane-packing multiple)."""
    TM_CAP = 8192
    sub = {1: 32, 2: 16}.get(itemsize, 8)        # packed-sublane granularity per dtype

    if M <= 128:
        tm = M                                    # full (short) last dim
    else:
        tm = max(128, min((M // 128) * 128, TM_CAP))

    if B <= sub:
        tb = B                                    # full (short) batch dim
    else:
        want = max(1, target_bytes // max(1, tm * itemsize))
        tb = min(((want + sub - 1) // sub) * sub, (B // sub) * sub)
        tb = max(tb, sub)

    # v7x megacore: make sure there are >= 2 blocks so both TensorCores get work.
    if pl.cdiv(B, tb) * pl.cdiv(M, tm) < 2:
        if tm >= 256:
            tm = ((tm // 2 + 127) // 128) * 128
        elif tb >= 2 * sub:
            tb = ((tb // 2 + sub - 1) // sub) * sub
    return tb, tm


def drop_path_pallas(x, drop_prob=0.0, *, training=False, key=None, seed=0,
                     target_tile_bytes=2 << 20, donate=False):
    """DropPath forward. x: (B, ...). Returns array of the same shape/dtype."""
    if drop_prob is None:                 # DropPath(drop_prob=None) -> identity
        drop_prob = 0.0
    if drop_prob == 0.0 or not training:
        return x                          # identity path, exactly as the PyTorch module
    assert 0.0 < drop_prob < 1.0
    keep_prob = 1.0 - float(drop_prob)

    orig_shape = x.shape
    B = orig_shape[0]
    M = int(math.prod(orig_shape[1:])) if len(orig_shape) > 1 else 1
    x2 = x.reshape(B, M)
    itemsize = x2.dtype.itemsize

    # Per-sample scale, computed once outside the hot loop.  Derived from the absolute
    # sample index via jax.random -> identical mask regardless of tiling / core order.
    if key is None:
        key = jax.random.PRNGKey(seed)
    u = jax.random.uniform(key, (B, 1), dtype=jnp.float32)       # U[0, 1), one per sample
    mask = jnp.floor(jnp.float32(keep_prob) + u)                 # {0.0, 1.0}, torch semantics
    scale = mask / jnp.float32(keep_prob)                        # 0 or 1/keep_prob, (B,1) f32

    tb, tm = _pick_tiles(B, M, itemsize, int(target_tile_bytes))
    grid = (pl.cdiv(B, tb), pl.cdiv(M, tm))

    # VMEM budget: double-buffered input + output tiles (+ scale), with headroom; clamped
    # so the same schedule fits v5e (16 MiB scoped default), v6e (32/128) and v7x (32/64).
    tile_bytes = tb * tm * itemsize
    needed = 2 * (2 * tile_bytes + tb * 4)
    vmem_limit = int(min(max(2 * needed, 32 << 20), 64 << 20))

    out = pl.pallas_call(
        _drop_path_kernel,
        out_shape=jax.ShapeDtypeStruct((B, M), x.dtype),
        grid=grid,
        in_specs=[pl.BlockSpec((tb, tm), lambda i, j: (i, j)),
                  pl.BlockSpec((tb, 1), lambda i, j: (i, 0))],
        out_specs=pl.BlockSpec((tb, tm), lambda i, j: (i, j)),
        compiler_params=pltpu.CompilerParams(
            dimension_semantics=("parallel", "parallel"),
            vmem_limit_bytes=vmem_limit),
        cost_estimate=pl.CostEstimate(
            flops=B * M, transcendentals=0,
            bytes_accessed=2 * B * M * itemsize + B * 4),
        input_output_aliases=({0: 0} if donate else {}),
    )(x2, scale)
    return out.reshape(orig_shape)


if __name__ == "__main__":
    root = jax.random.PRNGKey(0)
    k1, k2 = jax.random.split(root)

    # ---- shapes consistent with the module: (B, C, H, W) residual-branch activations ----
    B, C, H, W = 2, 4, 16, 16
    x = jax.random.normal(k1, (B, C, H, W), dtype=jnp.float32)
    drop_prob = 0.25
    keep_prob = 1.0 - drop_prob

    # 1) eval mode / drop_prob == 0  ->  exact identity (matches PyTorch)
    y_eval = jax.block_until_ready(drop_path_pallas(x, drop_prob, training=False))
    assert jnp.array_equal(y_eval, x)
    y_p0 = jax.block_until_ready(drop_path_pallas(x, 0.0, training=True))
    assert jnp.array_equal(y_p0, x)
    y_none = jax.block_until_ready(drop_path_pallas(x, None, training=True))
    assert jnp.array_equal(y_none, x)

    # 2) training mode: every sample is either dropped (all zeros) or scaled by 1/keep_prob.
    y = jax.block_until_ready(drop_path_pallas(x, drop_prob, training=True, seed=1234))
    assert y.shape == x.shape and y.dtype == x.dtype
    yr, xr = y.reshape(B, -1), x.reshape(B, -1)
    for b in range(B):
        kept = bool(jnp.allclose(yr[b], xr[b] / keep_prob, rtol=1e-6, atol=1e-6))
        dropped = bool(jnp.all(yr[b] == 0.0))
        assert kept or dropped, f"sample {b}: invalid drop-path output"

    # 3) larger batch: both grid axes tiled; per-sample mask consistent everywhere
    #    (scale is computed once, so tiling cannot break it) + loose empirical rate check.
    Bs, Ms = 256, 512
    xs = jax.random.normal(k2, (Bs, Ms), dtype=jnp.float32)
    dp = 0.5
    ys = jax.block_until_ready(drop_path_pallas(xs, dp, training=True, seed=7))
    row_dropped = jnp.all(ys == 0.0, axis=1)
    row_kept = jnp.all(jnp.isclose(ys, xs / (1.0 - dp), rtol=1e-6, atol=1e-6), axis=1)
    assert bool(jnp.all(row_dropped | row_kept))
    rate = float(jnp.mean(row_kept.astype(jnp.float32)))
    assert 0.2 < rate < 0.8, rate                    # ~Bernoulli(0.5), very loose bound

    # 4) bf16 smoke test: native-dtype multiply path (no whole-tile f32 upcast).
    yb = jax.block_until_ready(
        drop_path_pallas(x.astype(jnp.bfloat16), drop_prob, training=True, seed=3))
    assert yb.shape == x.shape and yb.dtype == jnp.bfloat16

    print("KERNEL_OK")
</pallas_src>

<mosaic_0001>
module attributes {stable_mosaic.version = 11 : i64} {
  func.func @_drop_path_kernel(%arg0: i32, %arg1: i32, %arg2: memref<2x512xf32, #tpu.memory_space<vmem>>, %arg3: memref<2x1xf32, #tpu.memory_space<vmem>>, %arg4: memref<2x512xf32, #tpu.memory_space<vmem>>) attributes {dimension_semantics = [#tpu.dimension_semantics<parallel>, #tpu.dimension_semantics<parallel>], iteration_bounds = array<i64: 1, 2>, scalar_prefetch = 0 : i64, scratch_operands = 0 : i64, tpu.core_type = #tpu.core_type<tc>, window_params = [{transform_indices = @transform_0, window_bounds = array<i64: 2, 512>}, {transform_indices = @transform_1, window_bounds = array<i64: 2, 1>}, {transform_indices = @transform_2, window_bounds = array<i64: 2, 512>}]} {
    %c0 = arith.constant 0 : index
    %c0_0 = arith.constant 0 : index
    %0 = vector.load %arg3[%c0, %c0_0] : memref<2x1xf32, #tpu.memory_space<vmem>>, vector<2x1xf32>
    %c0_1 = arith.constant 0 : index
    %c0_2 = arith.constant 0 : index
    %1 = vector.load %arg2[%c0_1, %c0_2] : memref<2x512xf32, #tpu.memory_space<vmem>>, vector<2x512xf32>
    %2 = vector.broadcast %0 : vector<2x1xf32> to vector<2x512xf32>
    %3 = arith.mulf %1, %2 : vector<2x512xf32>
    %c0_3 = arith.constant 0 : index
    %c0_4 = arith.constant 0 : index
    %4 = vector.load %arg4[%c0_3, %c0_4] : memref<2x512xf32, #tpu.memory_space<vmem>>, vector<2x512xf32>
    tpu.vector_store %arg4[%c0_3, %c0_4], %3 {strides = array<i32>} : memref<2x512xf32, #tpu.memory_space<vmem>>, vector<2x512xf32>,
    return
  }
  func.func @transform_0(%arg0: i32, %arg1: i32) -> (i32, i32) {
    %c0_i32 = arith.constant 0 : i32
    return %arg0, %arg1 : i32, i32
  }
  func.func @transform_1(%arg0: i32, %arg1: i32) -> (i32, i32) {
    %c0_i32 = arith.constant 0 : i32
    %c0_i32_0 = arith.constant 0 : i32
    return %arg0, %c0_i32 : i32, i32
  }
  func.func @transform_2(%arg0: i32, %arg1: i32) -> (i32, i32) {
    %c0_i32 = arith.constant 0 : i32
    return %arg0, %arg1 : i32, i32
  }
}

</mosaic_0001>

<bundles_post_ra>
// kernel: tpu_custom_call.1
= control target key start
LH: loop header
LB: loop body
LE: loop exit
PB: predicated region body
PF: predicated region fallthrough
CT: control target
= control target key end

     0   :  { %7 = vsyncpa [#allocation3], 0  ;;  %s667_s0 = inlined_call_operand.hbm [shape: f32[2,1024], index: 0, kind: input, shape index: {}]   ;;  %s668_s1 = inlined_call_operand.vmem [shape: f32[2,1], index: 1, kind: input, shape index: {}]   ;;  %s669_s2 = inlined_call_operand.hbm [shape: f32[2,1024], index: 2, kind: output, shape index: {}]  }
   0x1   :  { %9 = vsyncpa [#allocation3 + $0x1], 0 }
   0x2   :  { %10 = vsyncpa [#allocation4], 0 }
   0x3   :  { %12 = vsyncpa [#allocation4 + $0x1], 0  ;;  %s544_s9 = smov 0   ;;  %s546_s10 = smov 0  }
   0x4   :  { %s548_s11 = smov 0   ;;  %s550_s12 = smov 0  }
   0x5   :  { %s552_s13 = smov 0   ;;  %s554_s14 = smov 0  }
   0x6 LB: > { %s330_s15 = sadd.s32 4294967295, %s525_s14   ;;  %s331_s16 = sadd.s32 4294967294, %s525_s14   ;;  %s525_s14 = sphi %s554_s14, %s18_s14   ;;  %s521_s13 = sphi %s552_s13, %s678_s13   ;;  %s517_s12 = sphi %s550_s12, %s677_s12   ;;  %s513_s11 = sphi %s548_s11, %s676_s11   ;;  %s509_s10 = sphi %s546_s10, %s675_s10   ;;  %s505_s9 = sphi %s544_s9, %s674_s9  }
   0x7   : > { %s27_s17 = sadd.s32 1, %s521_s13  ;;  %s39_s18 = sadd.s32 1, %s513_s11 }
   0x8   : > { %p28_p0 = scmp.ge.s32.totalorder %s27_s17, 2  ;;  %p46_p1 = scmp.ne.s32.totalorder %s513_s11, %s509_s10 }
   0x9   : > { %p47_p2 = scmp.eq.s32.totalorder %s525_s14, 0  ;;  %p52_p3 = scmp.ne.s32.totalorder %s509_s10, %s505_s9 }
   0xa   : > { %s680_s17 = smov (%p28_p0, %s27_s17), 0  ;;  %p53_p5 = scmp.eq.s32.totalorder %s330_s15, 0 }
   0xb   : > { %p585_p4 = por %p47_p2, %p46_p1  ;;  %s35_s20 = ssub.s32 %s521_s13, %s680_s17 }
   0xc   : > { %p104_p6 = scmp.eq.s32.totalorder %s330_s15, 1  ;;  %p37_p7 = scmp.eq.s32.totalorder %s35_s20, 0 }
   0xd   : > { %p591_p8 = por %p53_p5, %p52_p3  ;;  %p110_p10 = scmp.eq.s32.totalorder %s331_s16, 1 }
   0xe   : > { %p595_p9 = por %p104_p6, %p46_p1  ;;  %p334_p12 = scmp.ge.s32.totalorder %s525_s14, 2 }
   0xf   : > { %s600_s23 = scalar_select %p37_p7, %s513_s11, %s39_s18  }
  0x10   : > { %p602_p11 = por %p110_p10, %p52_p3  ;;  %p360_p13 = scmp.lt.s32.totalorder %s525_s14, 2 }
  0x11   : > { %s137_s25 = sand.u32 1, %s513_s11   ;;  %s346_s27 = sshll.u32 %s521_s13, 3 }
  0x12   : > { %s335_s26 = sshll.u32 %s137_s25, 3  ;;  %s148_s30 = scalar_lea.hbm %s667_s0, %s346_s27 }
  0x13   : > { %s141_s3 = scalar_lea.vmem [#allocation2], %s335_s26  ;;  %s150_s5 = sshll.u32 %s148_s30, 4  ;;  %s151_s5 = int_to_ptr.hbm [resolvable:$true] %s150_s5 }
  0x14   : > { %s152_s4 = sshll.u32 %s141_s3, 4  ;;  %p353_p0 = pnand %p360_p13, %p585_p4  ;;  %s153_s4 = int_to_ptr.vmem [resolvable:$true] %s152_s4 }
  0x15   : > { %p338_p1 = scmp.ge.s32.totalorder %s525_s14, 1  ;;  %p157_p2 = scmp.lt.s32.totalorder %s525_s14, 3 }
  0x16   : > { %s138_s6 = scalar_lea.sflag [#allocation3], %s137_s25 }
  0x17   : > { %355 = dma.hbm_to_vmem [thread:$0]  (!%p353_p0), %s151_s5, 128, %s153_s4, %s138_s6  }
  0x18   : > { %p158_p3 = pnand %p338_p1, %p157_p2 }
  0x19   : > { %s618_s7 = sand.u32 (!%p158_p3), 1, %s509_s10  }
  0x1a   : > { %161 = sbr.rel (%p158_p3) target bundleno = 156 (0x9c), region = 28  ;;  %s339_s8 = sshll.u32 (!%p158_p3), %s618_s7, 3 }
  0x1b   : > { %s164_s15 = scalar_lea.sflag (!%p158_p3), [#allocation3], %s618_s7  ;;  %s167_s16 = scalar_lea.vmem (!%p158_p3), [#allocation2], %s339_s8 }
  0x1f   : > { %496 = dma.done.wait (%p591_p8), %s164_s15, 128  }
  0x20   : > { %498 = vsyncadd (%p591_p8), %s164_s15, 4294967168  ;;  %v527_v0 = vmov 0   ;;  %v199_v1 = vld [vmem:[%s668_s1] sm:$0x3]  ;;  %v528_v2 = vmov 269488144  }
  0x21   : > { %412 = vset.pattern.permute.xlu0 %v527_v0  ;;  %v206_v3 = vunpack.c.l.s4 %v528_v2  ;;  %s347_s20 = sshll.u32 %s517_s12, 3  ;;  %v200_v5 = vld [vmem:[%s167_s16] sm:$0xff]  ;;  %s192_s21 = scalar_lea.vmem [#allocation5], %s339_s8 }
  0x22   : > { %203 = vperm.xlu0 %412, %v199_v1   ;;  %s226_s27 = scalar_lea.hbm %s669_s2, %s347_s20  ;;  %s228_s28 = sshll.u32 %s192_s21, 4  ;;  %s229_s28 = int_to_ptr.vmem [resolvable:$true] %s228_s28 }
  0x23   : > { %v207_v4 = vunpack.c.0.s8 %v206_v3  ;;  %s230_s29 = sshll.u32 %s226_s27, 4  ;;  %s213_s30 = scalar_lea.sflag [#allocation4], %s618_s7  ;;  %s231_s29 = int_to_ptr.hbm [resolvable:$true] %s230_s29 }
  0x24   : > { %s457_s3 = sshra.s32 %s231_s29, 4  ;;  %s463_s6 = scalar_lea.hbm %s669_s2, 16  ;;  %s458_s3 = int_to_ptr.hbm [resolvable:$true] %s457_s3 }
  0x25   : > { %s459_s12 = scalar_lea.hbm %s458_s3, 8  ;;  %p464_p7 = scmp.lt.s32.totalorder %s458_s3, %s669_s2 }
  0x26   : > { %p460_p4 = scmp.ne.s32.totalorder %s458_s3, %s459_s12  ;;  %p465_p8 = scmp.lt.s32.totalorder %s463_s6, %s459_s12 }
  0x28   : > { %p461_p5 = pnand %p460_p4, %p595_p9  ;;  %p466_p10 = por %p465_p8, %p464_p7 }
  0x2a   : > { %p462_p6 = pneg %p461_p5 }
  0x2c   : > { %p467_p13 = pnand %p466_p10, %p462_p6 }
  0x94   : > { %v204_v6 = vpop.permute.xlu0 %203 }
  0x95   : > { %v208_v7 = vperm.slane %v204_v6, %v207_v4 }
  0x97   : > { %v210_v8 = vmul.f32 %v208_v7, %v200_v5 }
  0x99   : > { %211 = vst [vmem:[%s192_s21] sm:$0xff] %v210_v8 }
  0x9a   : > { %470 = shalt.err (!%p467_p13)
}
  0x9b   : > { %350 = dma.vmem_to_hbm [thread:$0]  (%p595_p9), %s229_s28, 128, %s231_s29, %s213_s30  }
  0x9c PF: > { %s242_s7 = sand.u32 1, %s505_s9   ;;  %p357_p0 = pnand %p334_p12, %p602_p11 }
  0x9d   : > { %s243_s16 = scalar_lea.sflag [#allocation4], %s242_s7 }
  0x9e   : > { %p358_p1 = pneg %p357_p0 }
  0xa0   : > { %500 = dma.done.wait (%p358_p1), %s243_s16, 128  }
  0xa1   : > { %502 = vsyncadd (%p358_p1), %s243_s16, 4294967168  ;;  %s18_s14 = sadd.s32 1, %s525_s14   ;;  %s674_s9 = smov %s509_s10 }
  0xa2   : > { %p15_p2 = scmp.ge.s32.totalorder %s18_s14, 4   ;;  %s675_s10 = smov %s513_s11 }
  0xa3   : > { %s676_s11 = smov %s600_s23  ;;  %s677_s12 = smov %s521_s13 }
  0xa4   : > { %s678_s13 = smov %s680_s17  ;;  %17 = sbr.rel (!%p15_p2) target bundleno = 6 (0x6), region = 76 }
  0xa9   :  { %249 = vsyncpa [#allocation3], 1 }
  0xaa   :  { %251 = vsyncpa [#allocation3 + $0x1], 1 }
  0xab   :  { %252 = vsyncpa [#allocation4], 1 }
  0xac   :  { %254 = vsyncpa [#allocation4 + $0x1], 1 }

</bundles_post_ra>
